<compile_context>
chip_gen: v5e
topology: v5e:2x2
jax: 0.10.0
libtpu: 0.0.40
codegen_flags: <defaults>
</compile_context>

<pallas_src>
import jax
import jax.numpy as jnp
from jax.experimental import pallas as pl
from jax.experimental.pallas import tpu as pltpu


# ---------------------------------------------------------------------------
# Tile selection
# ---------------------------------------------------------------------------
_TARGET_BLOCK_BYTES = 2 * 1024 * 1024   # ~2 MiB/buffer: 2 in + 2 out buffers
                                        # stay well inside v7x's 64 MiB VMEM
                                        # and the v5e/v6e scoped defaults.
_VMEM_LIMIT_BYTES = 48 * 1024 * 1024    # safe cap on all gens (v7x phys = 64 MiB)


def _largest_divisor(total, unit, cap):
    """Largest divisor of `total` that is a multiple of `unit` and <= cap.

    Caller guarantees total % unit == 0.
    """
    cap = max(unit, min(total, cap))
    best = unit
    d = unit
    while d <= cap:
        if total % d == 0:
            best = d
        d += unit
    return best


def _pick_tiles(rows, hw, itemsize):
    # Lane tile: largest lane-dense (multiple of 128) divisor of HW, else full HW.
    if hw % 128 == 0:
        t_hw = _largest_divisor(hw, 128, _TARGET_BLOCK_BYTES // (8 * itemsize))
    else:
        # TODO(synk): pad HW to a multiple of 128 in the wrapper to avoid
        # masked lane-sparse stores; full-extent block is still correct.
        t_hw = hw
    # Sublane tile: multiple of 8 dividing rows, sized to the byte target.
    if rows % 8 == 0:
        row_cap = max(8, _TARGET_BLOCK_BYTES // (t_hw * itemsize))
        t_rows = _largest_divisor(rows, 8, row_cap)
        # Expose >= 2 independent grid steps (v7x has 2 TensorCores).
        if t_rows == rows and rows >= 16 and (hw // t_hw) < 2:
            t_rows = _largest_divisor(rows, 8, rows // 2)
    else:
        t_rows = rows
    return t_rows, t_hw


# ---------------------------------------------------------------------------
# Kernels
# ---------------------------------------------------------------------------
def _pool_sum_kernel(x_ref, s_ref):
    # x_ref: (TR, THW) input dtype; s_ref: (TR, 1) f32, resident across HW axis.
    part = jnp.sum(x_ref[...].astype(jnp.float32), axis=-1, keepdims=True)

    @pl.when(pl.program_id(1) == 0)
    def _():
        s_ref[...] = part

    @pl.when(pl.program_id(1) > 0)
    def _():
        s_ref[...] += part


def _scale_kernel(x_ref, y_ref, o_ref):
    # x_ref/o_ref: (TR, THW) in the input dtype; y_ref: (TR, 1) f32 per-row gain.
    o_ref[...] = x_ref[...] * y_ref[...].astype(x_ref.dtype)


# ---------------------------------------------------------------------------
# pallas_call wrappers
# ---------------------------------------------------------------------------
def _row_sums(x_flat):
    rows, hw = x_flat.shape
    itemsize = x_flat.dtype.itemsize
    t_rows, t_hw = _pick_tiles(rows, hw, itemsize)
    cost = pl.CostEstimate(
        flops=rows * hw,
        transcendentals=0,
        bytes_accessed=rows * hw * itemsize + rows * 4,
    )
    return pl.pallas_call(
        _pool_sum_kernel,
        out_shape=jax.ShapeDtypeStruct((rows, 1), jnp.float32),
        grid_spec=pltpu.PrefetchScalarGridSpec(
            num_scalar_prefetch=0,
            grid=(rows // t_rows, hw // t_hw),
            in_specs=[pl.BlockSpec((t_rows, t_hw), lambda i, j: (i, j))],
            out_specs=pl.BlockSpec((t_rows, 1), lambda i, j: (i, 0)),
        ),
        compiler_params=pltpu.CompilerParams(
            dimension_semantics=("parallel", "arbitrary"),
            vmem_limit_bytes=_VMEM_LIMIT_BYTES,
        ),
        cost_estimate=cost,
    )(x_flat)


def _scale_rows(x_flat, y_col):
    rows, hw = x_flat.shape
    itemsize = x_flat.dtype.itemsize
    t_rows, t_hw = _pick_tiles(rows, hw, itemsize)
    cost = pl.CostEstimate(
        flops=rows * hw,
        transcendentals=0,
        bytes_accessed=2 * rows * hw * itemsize + rows * 4,
    )
    return pl.pallas_call(
        _scale_kernel,
        out_shape=jax.ShapeDtypeStruct((rows, hw), x_flat.dtype),
        grid_spec=pltpu.PrefetchScalarGridSpec(
            num_scalar_prefetch=0,
            grid=(rows // t_rows, hw // t_hw),
            in_specs=[
                pl.BlockSpec((t_rows, t_hw), lambda i, j: (i, j)),
                pl.BlockSpec((t_rows, 1), lambda i, j: (i, 0)),
            ],
            out_specs=pl.BlockSpec((t_rows, t_hw), lambda i, j: (i, j)),
        ),
        compiler_params=pltpu.CompilerParams(
            dimension_semantics=("parallel", "parallel"),
            vmem_limit_bytes=_VMEM_LIMIT_BYTES,
        ),
        cost_estimate=cost,
    )(x_flat, y_col)


# ---------------------------------------------------------------------------
# ECAM forward
# ---------------------------------------------------------------------------
def ecam(x, w1, b1, w2, b2):
    """x: (N, C, H, W); w1: (Hid, C), b1: (Hid,), w2: (C, Hid), b2: (C,)."""
    N, C, H, W = x.shape
    HW = H * W
    x_flat = x.reshape(N * C, HW)

    # Phase 1: global average pool (Pallas, HW-tiled reduction -> row sums).
    sums = _row_sums(x_flat).reshape(N, C)                       # (N, C) f32

    # Phase 2: squeeze-excite MLP, batched across N (tiny; plain JAX / XLA).
    # 1/HW folded into the first conv weight so phase 1 only needs sums.
    z1 = jnp.maximum(sums @ (w1.astype(jnp.float32) / HW).T + b1, 0.0)
    y = jax.nn.sigmoid(z1 @ w2.astype(jnp.float32).T + b2)       # (N, C)

    # Phase 3: broadcast scale (Pallas, fully parallel tiles, input dtype).
    out_flat = _scale_rows(x_flat, y.reshape(N * C, 1).astype(jnp.float32))
    return out_flat.reshape(N, C, H, W)


ecam_jit = jax.jit(ecam)


def ecam_reference(x, w1, b1, w2, b2):
    # Pure-JAX reference of the PyTorch forward (for correctness check).
    mean = jnp.mean(x, axis=(2, 3))                              # (N, C)
    z1 = jnp.maximum(mean @ w1.T + b1, 0.0)                      # (N, Hid)
    y = jax.nn.sigmoid(z1 @ w2.T + b2)[:, :, None, None]         # (N, C, 1, 1)
    return x * y


if __name__ == "__main__":
    # Shapes consistent with the module: num_feat=32, squeeze_factor=4 -> Hid=8.
    N, C, H, W = 2, 32, 16, 16
    squeeze_factor = 4
    Hid = C // squeeze_factor

    key = jax.random.PRNGKey(0)
    kx, kw1, kb1, kw2, kb2 = jax.random.split(key, 5)

    x = jax.random.normal(kx, (N, C, H, W), dtype=jnp.float32)
    # Deterministic synthetic parameters (1x1 conv weights squeezed to 2D).
    w1 = jax.random.normal(kw1, (Hid, C), dtype=jnp.float32) * 0.1
    b1 = jax.random.normal(kb1, (Hid,), dtype=jnp.float32) * 0.1
    w2 = jax.random.normal(kw2, (C, Hid), dtype=jnp.float32) * 0.1
    b2 = jax.random.normal(kb2, (C,), dtype=jnp.float32) * 0.1

    out = ecam_jit(x, w1, b1, w2, b2)
    out = jax.block_until_ready(out)

    ref = ecam_reference(x, w1, b1, w2, b2)
    assert out.shape == (N, C, H, W)
    assert jnp.allclose(out, ref, atol=1e-5, rtol=1e-5), "mismatch vs reference"

    print("KERNEL_OK")
</pallas_src>

<mosaic_0001>
module attributes {stable_mosaic.version = 11 : i64} {
  func.func @_pool_sum_kernel(%arg0: i32, %arg1: i32, %arg2: memref<32x256xf32, #tpu.memory_space<vmem>>, %arg3: memref<32x1xf32, #tpu.memory_space<vmem>>) attributes {dimension_semantics = [#tpu.dimension_semantics<parallel>, #tpu.dimension_semantics<arbitrary>], iteration_bounds = array<i64: 2, 1>, scalar_prefetch = 0 : i64, scratch_operands = 0 : i64, tpu.core_type = #tpu.core_type<tc>, window_params = [{transform_indices = @transform_0, window_bounds = array<i64: 32, 256>}, {transform_indices = @transform_1, window_bounds = array<i64: 32, 1>}]} {
    %c0 = arith.constant 0 : index
    %c0_0 = arith.constant 0 : index
    %0 = vector.load %arg2[%c0, %c0_0] : memref<32x256xf32, #tpu.memory_space<vmem>>, vector<32x256xf32>
    %cst = arith.constant dense<0.000000e+00> : vector<32xf32>
    %1 = vector.multi_reduction <add>, %0, %cst [1] : vector<32x256xf32> to vector<32xf32>
    %2 = vector.shape_cast %1 : vector<32xf32> to vector<32x1xf32>
    %c0_i32 = arith.constant 0 : i32
    %3 = arith.cmpi eq, %arg1, %c0_i32 : i32
    %4 = arith.extui %3 : i1 to i32
    %c0_i32_1 = arith.constant 0 : i32
    %5 = arith.cmpi ne, %4, %c0_i32_1 : i32
    scf.if %5 {
      %c0_4 = arith.constant 0 : index
      %c0_5 = arith.constant 0 : index
      %9 = vector.load %arg3[%c0_4, %c0_5] : memref<32x1xf32, #tpu.memory_space<vmem>>, vector<32x1xf32>
      tpu.vector_store %arg3[%c0_4, %c0_5], %2 {strides = array<i32>} : memref<32x1xf32, #tpu.memory_space<vmem>>, vector<32x1xf32>,
    } else {
    }
    %c0_i32_2 = arith.constant 0 : i32
    %6 = arith.cmpi sgt, %arg1, %c0_i32_2 : i32
    %7 = arith.extui %6 : i1 to i32
    %c0_i32_3 = arith.constant 0 : i32
    %8 = arith.cmpi ne, %7, %c0_i32_3 : i32
    scf.if %8 {
      %c0_4 = arith.constant 0 : index
      %c0_5 = arith.constant 0 : index
      %9 = vector.load %arg3[%c0_4, %c0_5] : memref<32x1xf32, #tpu.memory_space<vmem>>, vector<32x1xf32>
      %10 = arith.addf %9, %2 : vector<32x1xf32>
      %c0_6 = arith.constant 0 : index
      %c0_7 = arith.constant 0 : index
      %11 = vector.load %arg3[%c0_6, %c0_7] : memref<32x1xf32, #tpu.memory_space<vmem>>, vector<32x1xf32>
      tpu.vector_store %arg3[%c0_6, %c0_7], %10 {strides = array<i32>} : memref<32x1xf32, #tpu.memory_space<vmem>>, vector<32x1xf32>,
    } else {
    }
    return
  }
  func.func @transform_0(%arg0: i32, %arg1: i32) -> (i32, i32) {
    %c0_i32 = arith.constant 0 : i32
    return %arg0, %arg1 : i32, i32
  }
  func.func @transform_1(%arg0: i32, %arg1: i32) -> (i32, i32) {
    %c0_i32 = arith.constant 0 : i32
    %c0_i32_0 = arith.constant 0 : i32
    return %arg0, %c0_i32 : i32, i32
  }
}

module attributes {stable_mosaic.version = 11 : i64} {
  func.func @_scale_kernel(%arg0: i32, %arg1: i32, %arg2: memref<32x256xf32, #tpu.memory_space<vmem>>, %arg3: memref<32x1xf32, #tpu.memory_space<vmem>>, %arg4: memref<32x256xf32, #tpu.memory_space<vmem>>) attributes {dimension_semantics = [#tpu.dimension_semantics<parallel>, #tpu.dimension_semantics<parallel>], iteration_bounds = array<i64: 2, 1>, scalar_prefetch = 0 : i64, scratch_operands = 0 : i64, tpu.core_type = #tpu.core_type<tc>, window_params = [{transform_indices = @transform_0, window_bounds = array<i64: 32, 256>}, {transform_indices = @transform_1, window_bounds = array<i64: 32, 1>}, {transform_indices = @transform_2, window_bounds = array<i64: 32, 256>}]} {
    %c0 = arith.constant 0 : index
    %c0_0 = arith.constant 0 : index
    %0 = vector.load %arg2[%c0, %c0_0] : memref<32x256xf32, #tpu.memory_space<vmem>>, vector<32x256xf32>
    %c0_1 = arith.constant 0 : index
    %c0_2 = arith.constant 0 : index
    %1 = vector.load %arg3[%c0_1, %c0_2] : memref<32x1xf32, #tpu.memory_space<vmem>>, vector<32x1xf32>
    %2 = vector.broadcast %1 : vector<32x1xf32> to vector<32x256xf32>
    %3 = arith.mulf %0, %2 : vector<32x256xf32>
    %c0_3 = arith.constant 0 : index
    %c0_4 = arith.constant 0 : index
    %4 = vector.load %arg4[%c0_3, %c0_4] : memref<32x256xf32, #tpu.memory_space<vmem>>, vector<32x256xf32>
    tpu.vector_store %arg4[%c0_3, %c0_4], %3 {strides = array<i32>} : memref<32x256xf32, #tpu.memory_space<vmem>>, vector<32x256xf32>,
    return
  }
  func.func @transform_0(%arg0: i32, %arg1: i32) -> (i32, i32) {
    %c0_i32 = arith.constant 0 : i32
    return %arg0, %arg1 : i32, i32
  }
  func.func @transform_1(%arg0: i32, %arg1: i32) -> (i32, i32) {
    %c0_i32 = arith.constant 0 : i32
    %c0_i32_0 = arith.constant 0 : i32
    return %arg0, %c0_i32 : i32, i32
  }
  func.func @transform_2(%arg0: i32, %arg1: i32) -> (i32, i32) {
    %c0_i32 = arith.constant 0 : i32
    return %arg0, %arg1 : i32, i32
  }
}

</mosaic_0001>

<bundles_post_ra>
// kernel: ecam.2
= control target key start
LH: loop header
LB: loop body
LE: loop exit
PB: predicated region body
PF: predicated region fallthrough
CT: control target
= control target key end

     0   :  { %s339_s6 = smov 0   ;;  %s341_s7 = smov 0   ;;  %s372_s0 = inlined_call_operand.vmem [shape: f32[64,256], index: 0, kind: input, shape index: {}]   ;;  %s373_s1 = inlined_call_operand.vmem [shape: f32[64,1], index: 1, kind: output, shape index: {}]  }
   0x1   :  { %s343_s8 = smov 0  }
   0x2 LB: > { %s23_s9 = sadd.s32 1, %s323_s7  ;;  %p272_p0 = scmp.ge.s32.totalorder %s327_s8, 1  ;;  %s327_s8 = sphi %s343_s8, %s11_s8   ;;  %s323_s7 = sphi %s341_s7, %s375_s7   ;;  %s319_s6 = sphi %s339_s6, %s374_s6  }
   0x3   : > { %p25_p1 = scmp.ge.s32.totalorder %s23_s9, 2  ;;  %p108_p2 = scmp.lt.s32.totalorder %s327_s8, 3 }
   0x5   : > { %s377_s9 = smov (%p25_p1, %s23_s9), 0  ;;  %p109_p3 = pnand %p272_p0, %p108_p2 }
   0x6   : > { %s273_s10 = sshll.u32 (!%p109_p3), %s319_s6, 2 }
   0x7   : > { %112 = sbr.rel (%p109_p3) target bundleno = 144 (0x90), region = 24  ;;  %p135_p4 = scmp.lt.s32.totalorder (!%p109_p3), %s273_s10, 7 }
   0xc   : > { %s379_s10 = smov (!%p135_p4, %s273_s10), 7  ;;  %vm175_vm0 = vcmask 7168  }
   0xd   : > { %s280_s11 = sshll.u32 %s379_s10, 4  ;;  %s277_s15 = sshll.u32 %s379_s10, 3 }
   0xe   : > { %s142_s14 = scalar_lea.vmem %s372_s0, %s280_s11  ;;  %s149_s18 = scalar_lea.vmem %s373_s1, %s277_s15 }
   0xf   : > { %v151_v0 = vld [vmem:[%s142_s14] sm:$0xff]  ;;  %v152_v1 = vld [vmem:[%s142_s14 + $0x8] sm:$0xff]  ;;  %v153_v6 = vld [vmem:[%s142_s14 + $0x10] sm:$0xff] }
  0x10   : > { %v155_v2 = vld [vmem:[%s142_s14 + $0x20] sm:$0xff]  ;;  %v159_v3 = vadd.f32 %v152_v1, %v151_v0  ;;  %v156_v4 = vld [vmem:[%s142_s14 + $0x28] sm:$0xff]  ;;  %v154_v7 = vld [vmem:[%s142_s14 + $0x18] sm:$0xff] }
  0x11   : > { %v165_v5 = vadd.f32 %v156_v4, %v155_v2  ;;  %v157_v8 = vld [vmem:[%s142_s14 + $0x30] sm:$0xff]  ;;  %v158_v9 = vld [vmem:[%s142_s14 + $0x38] sm:$0xff]  ;;  %v162_v10 = vadd.f32 %v154_v7, %v153_v6 }
  0x12   : > { %160 = vadd.xlane.f32.xlu0 %v159_v3  ;;  %v168_v11 = vadd.f32 %v158_v9, %v157_v8 }
  0x13   : > { %166 = vadd.xlane.f32.xlu1 %v165_v5 }
  0x1a   : > { %163 = vadd.xlane.f32.xlu0 %v162_v10 }
  0x1b   : > { %169 = vadd.xlane.f32.xlu1 %v168_v11 }
  0x85   : > { %v161_v12 = vpop.xlane.xlu0 %160 }
  0x86   : > { %176 = vst.msk [vmem:[%s149_s18] sm:$0xff] %vm175_vm0, %v161_v12  ;;  %v167_v13 = vpop.xlane.xlu1 %166 }
  0x87   : > { %178 = vst.msk [vmem:[%s149_s18 + $0x10] sm:$0xff] %vm175_vm0, %v167_v13 }
  0x8d   : > { %v164_v14 = vpop.xlane.xlu0 %163 }
  0x8e   : > { %177 = vst.msk [vmem:[%s149_s18 + $0x8] sm:$0xff] %vm175_vm0, %v164_v14  ;;  %v170_v15 = vpop.xlane.xlu1 %169 }
  0x8f   : > { %179 = vst.msk [vmem:[%s149_s18 + $0x18] sm:$0xff] %vm175_vm0, %v170_v15 }
  0x90 PF: > { %s11_s8 = sadd.s32 1, %s327_s8   ;;  %s374_s6 = smov %s323_s7 }
  0x91   : > { %p8_p5 = scmp.ge.s32.totalorder %s11_s8, 4   ;;  %s375_s7 = smov %s377_s9 }
  0x93   :  { %10 = sbr.rel (!%p8_p5) target bundleno = 2 (0x2), region = 62 }

// kernel: ecam.3
= control target key start
LH: loop header
LB: loop body
LE: loop exit
PB: predicated region body
PF: predicated region fallthrough
CT: control target
= control target key end

     0   :  { %s447_s9 = smov 0   ;;  %s449_s10 = smov 0   ;;  %s483_s0 = inlined_call_operand.vmem [shape: f32[64,256], index: 0, kind: input, shape index: {}]   ;;  %s484_s1 = inlined_call_operand.vmem [shape: f32[64,1], index: 1, kind: input, shape index: {}]   ;;  %s485_s2 = inlined_call_operand.vmem [shape: f32[64,256], index: 2, kind: output, shape index: {}]  }
   0x1   :  { %s451_s11 = smov 0  }
   0x2 LB: > { %s24_s12 = sadd.s32 1, %s425_s10  ;;  %p367_p0 = scmp.ge.s32.totalorder %s429_s11, 1  ;;  %s429_s11 = sphi %s451_s11, %s12_s11   ;;  %s425_s10 = sphi %s449_s10, %s487_s10   ;;  %s421_s9 = sphi %s447_s9, %s486_s9  }
   0x3   : > { %p26_p1 = scmp.ge.s32.totalorder %s24_s12, 2  ;;  %p146_p2 = scmp.lt.s32.totalorder %s429_s11, 3 }
   0x5   : > { %s489_s12 = smov (%p26_p1, %s24_s12), 0  ;;  %p147_p3 = pnand %p367_p0, %p146_p2 }
   0x6   : > { %s368_s13 = sshll.u32 (!%p147_p3), %s421_s9, 2 }
   0x7   : > { %150 = sbr.rel (%p147_p3) target bundleno = 145 (0x91), region = 28  ;;  %p185_p4 = scmp.lt.s32.totalorder (!%p147_p3), %s368_s13, 7 }
   0xc   : > { %v431_v0 = vmov 0   ;;  %s491_s13 = smov (!%p185_p4, %s368_s13), 7 }
   0xd   : > { %406 = vset.pattern.permute.xlu1 %v431_v0  ;;  %405 = vset.pattern.permute.xlu0 %v431_v0  ;;  %s372_s14 = sshll.u32 %s491_s13, 3  ;;  %s378_s18 = sshll.u32 %s491_s13, 4 }
   0xe   : > { %s199_s17 = scalar_lea.vmem %s484_s1, %s372_s14  ;;  %s192_s21 = scalar_lea.vmem %s483_s0, %s378_s18 }
   0xf   : > { %v223_v1 = vld [vmem:[%s199_s17 + $0x10] sm:$0xff]  ;;  %v221_v2 = vld [vmem:[%s199_s17] sm:$0xff]  ;;  %v224_v3 = vld [vmem:[%s199_s17 + $0x18] sm:$0xff]  ;;  %s210_s24 = scalar_lea.vmem %s485_s2, %s378_s18 }
  0x10   : > { %237 = vperm.xlu1 %406, %v223_v1   ;;  %227 = vperm.xlu0 %405, %v221_v2   ;;  %v222_v4 = vld [vmem:[%s199_s17 + $0x8] sm:$0xff]  ;;  %v213_v5 = vld [vmem:[%s192_s21] sm:$0xff]  ;;  %v215_v11 = vld [vmem:[%s192_s21 + $0x10] sm:$0xff] }
  0x11   : > { %v214_v6 = vld [vmem:[%s192_s21 + $0x8] sm:$0xff]  ;;  %v216_v12 = vld [vmem:[%s192_s21 + $0x18] sm:$0xff]  ;;  %v217_v13 = vld [vmem:[%s192_s21 + $0x20] sm:$0xff] }
  0x12   : > { %v218_v15 = vld [vmem:[%s192_s21 + $0x28] sm:$0xff]  ;;  %v219_v19 = vld [vmem:[%s192_s21 + $0x30] sm:$0xff]  ;;  %v220_v21 = vld [vmem:[%s192_s21 + $0x38] sm:$0xff] }
  0x18   : > { %242 = vperm.xlu1 %406, %v224_v3   ;;  %232 = vperm.xlu0 %405, %v222_v4  }
  0x82   : > { %v238_v7 = vpop.permute.xlu1 %237  ;;  %v228_v8 = vpop.permute.xlu0 %227 }
  0x83   : > { %v245_v9 = vmul.f32 %v228_v8, %v213_v5  ;;  %v246_v10 = vmul.f32 %v228_v8, %v214_v6  ;;  %v249_v20 = vmul.f32 %v238_v7, %v217_v13  ;;  %v250_v22 = vmul.f32 %v238_v7, %v218_v15 }
  0x85   : > { %253 = vst [vmem:[%s210_s24] sm:$0xff] %v245_v9 }
  0x86   : > { %254 = vst [vmem:[%s210_s24 + $0x8] sm:$0xff] %v246_v10 }
  0x87   : > { %257 = vst [vmem:[%s210_s24 + $0x20] sm:$0xff] %v249_v20 }
  0x88   : > { %258 = vst [vmem:[%s210_s24 + $0x28] sm:$0xff] %v250_v22 }
  0x8a   : > { %v233_v14 = vpop.permute.xlu0 %232  ;;  %v243_v18 = vpop.permute.xlu1 %242 }
  0x8b   : > { %v247_v16 = vmul.f32 %v233_v14, %v215_v11  ;;  %v248_v17 = vmul.f32 %v233_v14, %v216_v12  ;;  %v251_v23 = vmul.f32 %v243_v18, %v219_v19  ;;  %v252_v24 = vmul.f32 %v243_v18, %v220_v21 }
  0x8d   : > { %255 = vst [vmem:[%s210_s24 + $0x10] sm:$0xff] %v247_v16 }
  0x8e   : > { %256 = vst [vmem:[%s210_s24 + $0x18] sm:$0xff] %v248_v17 }
  0x8f   : > { %259 = vst [vmem:[%s210_s24 + $0x30] sm:$0xff] %v251_v23 }
  0x90   : > { %260 = vst [vmem:[%s210_s24 + $0x38] sm:$0xff] %v252_v24 }
  0x91 PF: > { %s12_s11 = sadd.s32 1, %s429_s11   ;;  %s486_s9 = smov %s425_s10 }
  0x92   : > { %p9_p5 = scmp.ge.s32.totalorder %s12_s11, 4   ;;  %s487_s10 = smov %s489_s12 }
  0x94   :  { %11 = sbr.rel (!%p9_p5) target bundleno = 2 (0x2), region = 61 }

</bundles_post_ra>
